<compile_context>
chip_gen: v7x
topology: tpu7x:2x2x1
jax: 0.10.0
libtpu: 0.0.40
codegen_flags: <defaults>
</compile_context>

<pallas_src>
import functools

import jax
import jax.numpy as jnp
from jax.experimental import pallas as pl
from jax.experimental.pallas import tpu as pltpu

LANE = 128      # f32 lane width
SUBLANE = 8     # f32 sublane height


# ---------------------------------------------------------------------------
# Pallas kernels
# ---------------------------------------------------------------------------
def _weighted_kernel(hvs_ref, wg_ref, wt_ref, bt_ref, bg_ref, out_ref):
    """sigmoid(hvs @ w_gate + b_gate) * (hvs @ W + b) for one node-row tile.

    hvs_ref: [TILE_N, H]    node reps (native width H - no lane padding)
    wg_ref : [1, H]         gate weight as a row vector (VMEM, resident)
    wt_ref : [H, Hp]        node_to_graph weight, cols zero-padded (resident)
    bt_ref : [1, Hp]        node_to_graph bias (resident)
    bg_ref : [1, 1]         gate bias (SMEM scalar)
    out_ref: [TILE_N, Hp]   lane-dense output tile
    """
    hvs = hvs_ref[...]

    # Gate on the VPU/XLU: broadcast multiply + lane reduce in f32.  A
    # [*,H]@[H,1] matmul would use 1 of 128/256 MXU output lanes - keep the
    # MXU for the real HxH projection below.
    prod = hvs.astype(jnp.float32) * wg_ref[...].astype(jnp.float32)
    gate_logits = jnp.sum(prod, axis=-1, keepdims=True) + bg_ref[0, 0]
    gate = jax.nn.sigmoid(gate_logits)                                 # [TILE_N, 1]

    proj = jnp.dot(hvs, wt_ref[...],
                   preferred_element_type=jnp.float32) + bt_ref[...]   # [TILE_N, Hp]

    out_ref[...] = (gate * proj).astype(out_ref.dtype)


def _attention_sum_kernel(hvs_ref, out_ref):
    """Resident f32 accumulator: softmax over a size-1 axis is all-ones, so
    the 'attention' aggregation reduces exactly to sum(hvs, axis=0)."""
    @pl.when(pl.program_id(0) == 0)
    def _():
        out_ref[...] = jnp.zeros_like(out_ref)

    out_ref[...] += jnp.sum(hvs_ref[...].astype(jnp.float32),
                            axis=0, keepdims=True)


# ---------------------------------------------------------------------------
# Wrapper helpers
# ---------------------------------------------------------------------------
def _round_up(x, m):
    return ((x + m - 1) // m) * m


def _pad2(x, rows, cols):
    r, c = x.shape
    return jnp.pad(x, ((0, rows - r), (0, cols - c)))


def _choose_tiles(n, max_tile):
    """Node-axis tiling that minimizes padding: big tiles, but never more than
    one tile's worth of row-padding waste."""
    n8 = _round_up(max(n, 1), SUBLANE)
    num_tiles = -(-n8 // max_tile)                     # ceil
    tile_n = _round_up(-(-n8 // num_tiles), SUBLANE)   # ceil, sublane-aligned
    return tile_n, num_tiles


def _vmem_limit(resident_bytes, pipelined_bytes):
    # resident operands + double-buffered pipeline blocks + headroom, clamped
    # so the request stays sane on v7x's 64 MiB VMEM.
    total = resident_bytes + 2 * pipelined_bytes + (2 << 20)
    return int(min(max(total, 4 << 20), 64 << 20))


# ---------------------------------------------------------------------------
# Public wrappers
# ---------------------------------------------------------------------------
@functools.partial(jax.jit, static_argnames=("max_tile",))
def graph_aggregate_weighted(hvs, w_gate, b_gate, w_n2g, b_n2g, *, max_tile=512):
    n, h = hvs.shape
    itemsize = jnp.dtype(hvs.dtype).itemsize
    w_itemsize = jnp.dtype(w_n2g.dtype).itemsize
    hp = _round_up(h, LANE)                        # lane-dense output stores
    tile_n, num_tiles = _choose_tiles(n, max_tile)
    n_pad = tile_n * num_tiles

    hvs_p = _pad2(hvs, n_pad, h)                   # pad rows only; H stays native
    wg_row = w_gate.T                              # [1, h] gate weight row vector
    wt_p = _pad2(w_n2g, h, hp)                     # [h, hp] pad output columns only
    bt_p = _pad2(b_n2g, 1, hp)                     # [1, hp]
    # TODO(synk): for large H cast wt_p / hvs to bf16 (f32 accumulation) to halve
    # VMEM/HBM footprint, and add a second grid axis over output columns once the
    # resident [H, Hp] weight no longer fits VMEM.

    resident = (h * hp + hp + h) * w_itemsize      # weights + biases stay in VMEM
    pipelined = tile_n * (h + hp) * itemsize       # hvs tile in + out tile

    out = pl.pallas_call(
        _weighted_kernel,
        out_shape=jax.ShapeDtypeStruct((n_pad, hp), hvs.dtype),
        grid=(num_tiles,),
        in_specs=[
            pl.BlockSpec((tile_n, h), lambda i: (i, 0)),        # hvs tile
            pl.BlockSpec((1, h), lambda i: (0, 0)),             # gate weight row (resident)
            pl.BlockSpec((h, hp), lambda i: (0, 0)),            # W (resident)
            pl.BlockSpec((1, hp), lambda i: (0, 0)),            # bias (resident)
            pl.BlockSpec(memory_space=pltpu.MemorySpace.SMEM),  # gate bias scalar
        ],
        out_specs=pl.BlockSpec((tile_n, hp), lambda i: (i, 0)),
        compiler_params=pltpu.CompilerParams(
            dimension_semantics=("parallel",),
            vmem_limit_bytes=_vmem_limit(resident, pipelined)),
    )(hvs_p, wg_row, wt_p, bt_p, b_gate)

    return out[:n, :h]


@functools.partial(jax.jit, static_argnames=("max_tile",))
def graph_aggregate_attention(hvs, verb_mask, w_v, b_v, w_n, b_n, w_o, b_o, *,
                              max_tile=512):
    # Legacy nn.Softmax() on the [N, 1] score tensor => softmax over a size-1
    # axis => all-ones node weights, so the whole verb/score path is
    # mathematically dead and graph_rep == sum(hvs, axis=0).  The projection
    # parameters are accepted for API fidelity but are not needed on-device.
    del w_v, b_v, w_n, b_n, w_o, b_o

    n, h = hvs.shape
    itemsize = jnp.dtype(hvs.dtype).itemsize
    tile_n, num_tiles = _choose_tiles(n, max_tile)
    n_pad = tile_n * num_tiles

    hvs_p = _pad2(hvs, n_pad, h)                   # zero rows add nothing to the sum

    out = pl.pallas_call(
        _attention_sum_kernel,
        out_shape=jax.ShapeDtypeStruct((1, h), jnp.float32),
        grid=(num_tiles,),
        in_specs=[pl.BlockSpec((tile_n, h), lambda i: (i, 0))],
        out_specs=pl.BlockSpec((1, h), lambda i: (0, 0)),        # resident accumulator
        compiler_params=pltpu.CompilerParams(
            dimension_semantics=("arbitrary",),                  # reduction axis
            vmem_limit_bytes=_vmem_limit(h * 4, tile_n * h * itemsize)),
    )(hvs_p)

    graph_rep = out[0].astype(hvs.dtype)           # shape [H]
    # Only observable effect of the dead score path: a graph with no verb nodes
    # makes verb_reps.mean() NaN, which propagates to the whole output.
    has_verb = jnp.sum(verb_mask) > 0
    return jnp.where(has_verb, graph_rep, jnp.full_like(graph_rep, jnp.nan))


# ---------------------------------------------------------------------------
# Deterministic parameter construction (PyTorch Linear stores [out, in]; here
# we build [in, out] directly so kernels use x @ W + b).
# ---------------------------------------------------------------------------
def make_params(key, node_hidden_size):
    h = node_hidden_size
    keys = jax.random.split(key, 10)
    scale = 1.0 / jnp.sqrt(h)

    def u(k, shape):
        return jax.random.uniform(k, shape, jnp.float32, -scale, scale)

    return {
        # node_gating = Linear(H, 1) + Sigmoid
        "w_gate": u(keys[0], (h, 1)),
        "b_gate": u(keys[1], (1, 1)),
        # node_to_graph = Linear(H, H)
        "w_n2g": u(keys[2], (h, h)),
        "b_n2g": u(keys[3], (1, h)),
        # W_verbs = Linear(H, H)
        "w_v": u(keys[4], (h, h)),
        "b_v": u(keys[5], (1, h)),
        # W_nodes = Linear(H, H)
        "w_n": u(keys[6], (h, h)),
        "b_n": u(keys[7], (1, h)),
        # W_out = Linear(H, 1)
        "w_o": u(keys[8], (h, 1)),
        "b_o": u(keys[9], (1, 1)),
    }


# ---------------------------------------------------------------------------
# Pure-JAX references mirroring the PyTorch forward (including the full dead
# score path) used as semantic checks of the optimized kernels.
# ---------------------------------------------------------------------------
def ref_weighted(hvs, p):
    gate = jax.nn.sigmoid(hvs @ p["w_gate"] + p["b_gate"])
    return gate * (hvs @ p["w_n2g"] + p["b_n2g"])


def ref_attention(hvs, verb_indices, p):
    verb_mean = jnp.mean(hvs[jnp.array(verb_indices)], axis=0)
    tvr = verb_mean @ p["w_v"] + p["b_v"][0]
    tnr = hvs @ p["w_n"] + p["b_n"]
    scores = jnp.tanh(tvr + tnr) @ p["w_o"] + p["b_o"]
    weights = jax.nn.softmax(scores, axis=1)    # legacy nn.Softmax() => dim=1
    return jnp.sum(weights * hvs, axis=0)


# ---------------------------------------------------------------------------
if __name__ == "__main__":
    node_hidden_size = 32
    num_nodes = 10          # deliberately not sublane-aligned -> exercises padding/slicing

    key = jax.random.PRNGKey(0)
    k_params, k_hvs = jax.random.split(key)
    params = make_params(k_params, node_hidden_size)

    # hvs: node representations, shape [N, H]
    hvs = jax.random.normal(k_hvs, (num_nodes, node_hidden_size), jnp.float32)

    # Small synthetic graph: nodes 1, 4, 6 are verbs ('V'), others 'N'.
    graph = {
        "nodes": [
            {"node_id": i, "type": ("V" if i in (1, 4, 6) else "N")}
            for i in range(num_nodes)
        ]
    }
    verb_indices = [nd["node_id"] for nd in graph["nodes"] if nd["type"] == "V"]
    verb_mask = jnp.zeros((1, num_nodes), jnp.float32)
    verb_mask = verb_mask.at[0, jnp.array(verb_indices)].set(1.0)

    ref_w = ref_weighted(hvs, params)
    ref_a = ref_attention(hvs, verb_indices, params)

    # Check both the single-tile grid (default) and a multi-tile grid (small
    # max_tile) so the accumulator / parallel-tile paths are exercised.
    for mt in (512, 8):
        out_w = jax.block_until_ready(graph_aggregate_weighted(
            hvs, params["w_gate"], params["b_gate"],
            params["w_n2g"], params["b_n2g"], max_tile=mt))
        assert out_w.shape == (num_nodes, node_hidden_size)
        assert jnp.allclose(out_w, ref_w, atol=1e-5, rtol=1e-5)

        out_a = jax.block_until_ready(graph_aggregate_attention(
            hvs, verb_mask, params["w_v"], params["b_v"],
            params["w_n"], params["b_n"], params["w_o"], params["b_o"],
            max_tile=mt))
        assert out_a.shape == (node_hidden_size,)
        assert jnp.allclose(out_a, ref_a, atol=1e-5, rtol=1e-5)

    print("KERNEL_OK")
</pallas_src>

<mosaic_0001>
module attributes {stable_mosaic.version = 11 : i64} {
  func.func @_weighted_kernel(%arg0: i32, %arg1: memref<16x32xf32, #tpu.memory_space<vmem>>, %arg2: memref<1x32xf32, #tpu.memory_space<vmem>>, %arg3: memref<32x128xf32, #tpu.memory_space<vmem>>, %arg4: memref<1x128xf32, #tpu.memory_space<vmem>>, %arg5: memref<1x1xf32, #tpu.memory_space<smem>>, %arg6: memref<16x128xf32, #tpu.memory_space<vmem>>) attributes {dimension_semantics = [#tpu.dimension_semantics<parallel>], iteration_bounds = array<i64: 1>, scalar_prefetch = 0 : i64, scratch_operands = 0 : i64, tpu.core_type = #tpu.core_type<tc>, window_params = [{transform_indices = @transform_0, window_bounds = array<i64: 16, 32>}, {pipeline_mode = #tpu.pipeline_mode<synchronous>, transform_indices = @transform_1, window_bounds = array<i64: 1, 32>}, {pipeline_mode = #tpu.pipeline_mode<synchronous>, transform_indices = @transform_2, window_bounds = array<i64: 32, 128>}, {pipeline_mode = #tpu.pipeline_mode<synchronous>, transform_indices = @transform_3, window_bounds = array<i64: 1, 128>}, {transform_indices = @transform_4, window_bounds = array<i64: 1, 1>}, {transform_indices = @transform_5, window_bounds = array<i64: 16, 128>}]} {
    %c0 = arith.constant 0 : index
    %c0_0 = arith.constant 0 : index
    %0 = vector.load %arg1[%c0, %c0_0] : memref<16x32xf32, #tpu.memory_space<vmem>>, vector<16x32xf32>
    %c0_1 = arith.constant 0 : index
    %c0_2 = arith.constant 0 : index
    %1 = vector.load %arg2[%c0_1, %c0_2] : memref<1x32xf32, #tpu.memory_space<vmem>>, vector<1x32xf32>
    %2 = vector.broadcast %1 : vector<1x32xf32> to vector<16x32xf32>
    %3 = arith.mulf %0, %2 : vector<16x32xf32>
    %cst = arith.constant dense<0.000000e+00> : vector<16xf32>
    %4 = vector.multi_reduction <add>, %3, %cst [1] : vector<16x32xf32> to vector<16xf32>
    %5 = vector.shape_cast %4 : vector<16xf32> to vector<16x1xf32>
    %c0_3 = arith.constant 0 : index
    %c0_4 = arith.constant 0 : index
    %6 = memref.load %arg5[%c0_3, %c0_4] : memref<1x1xf32, #tpu.memory_space<smem>>
    %7 = vector.broadcast %6 : f32 to vector<16x1xf32>
    %8 = arith.addf %5, %7 : vector<16x1xf32>
    %9 = arith.negf %8 : vector<16x1xf32>
    %10 = math.exp %9 : vector<16x1xf32>
    %cst_5 = arith.constant 1.000000e+00 : f32
    %11 = vector.broadcast %cst_5 : f32 to vector<16x1xf32>
    %12 = arith.addf %11, %10 : vector<16x1xf32>
    %13 = arith.divf %11, %12 : vector<16x1xf32>
    %c0_6 = arith.constant 0 : index
    %c0_7 = arith.constant 0 : index
    %14 = vector.load %arg3[%c0_6, %c0_7] : memref<32x128xf32, #tpu.memory_space<vmem>>, vector<32x128xf32>
    %cst_8 = arith.constant dense<0.000000e+00> : vector<16x128xf32>
    %15 = tpu.matmul %0, %14, %cst_8 {dimension_numbers = #tpu.dot_dimension_numbers<[1], [0], [0], [1], [0, 0, 1, 1], [], []>} : vector<16x32xf32>, vector<32x128xf32>, vector<16x128xf32> -> vector<16x128xf32>
    %c0_9 = arith.constant 0 : index
    %c0_10 = arith.constant 0 : index
    %16 = vector.load %arg4[%c0_9, %c0_10] : memref<1x128xf32, #tpu.memory_space<vmem>>, vector<1x128xf32>
    %17 = vector.broadcast %16 : vector<1x128xf32> to vector<16x128xf32>
    %18 = arith.addf %15, %17 : vector<16x128xf32>
    %19 = vector.broadcast %13 : vector<16x1xf32> to vector<16x128xf32>
    %20 = arith.mulf %19, %18 : vector<16x128xf32>
    %c0_11 = arith.constant 0 : index
    %c0_12 = arith.constant 0 : index
    %21 = vector.load %arg6[%c0_11, %c0_12] : memref<16x128xf32, #tpu.memory_space<vmem>>, vector<16x128xf32>
    tpu.vector_store %arg6[%c0_11, %c0_12], %20 {strides = array<i32>} : memref<16x128xf32, #tpu.memory_space<vmem>>, vector<16x128xf32>,
    return
  }
  func.func @transform_0(%arg0: i32) -> (i32, i32) {
    %c0_i32 = arith.constant 0 : i32
    %c0_i32_0 = arith.constant 0 : i32
    return %arg0, %c0_i32 : i32, i32
  }
  func.func @transform_1(%arg0: i32) -> (i32, i32) {
    %c0_i32 = arith.constant 0 : i32
    %c0_i32_0 = arith.constant 0 : i32
    %c0_i32_1 = arith.constant 0 : i32
    return %c0_i32, %c0_i32_0 : i32, i32
  }
  func.func @transform_2(%arg0: i32) -> (i32, i32) {
    %c0_i32 = arith.constant 0 : i32
    %c0_i32_0 = arith.constant 0 : i32
    %c0_i32_1 = arith.constant 0 : i32
    return %c0_i32, %c0_i32_0 : i32, i32
  }
  func.func @transform_3(%arg0: i32) -> (i32, i32) {
    %c0_i32 = arith.constant 0 : i32
    %c0_i32_0 = arith.constant 0 : i32
    %c0_i32_1 = arith.constant 0 : i32
    return %c0_i32, %c0_i32_0 : i32, i32
  }
  func.func @transform_4(%arg0: i32) -> (i32, i32) {
    %c0_i32 = arith.constant 0 : i32
    %c0_i32_0 = arith.constant 0 : i32
    %c0_i32_1 = arith.constant 0 : i32
    return %c0_i32, %c0_i32_0 : i32, i32
  }
  func.func @transform_5(%arg0: i32) -> (i32, i32) {
    %c0_i32 = arith.constant 0 : i32
    %c0_i32_0 = arith.constant 0 : i32
    return %arg0, %c0_i32 : i32, i32
  }
}

</mosaic_0001>

<bundles_post_ra>
// kernel: graph_aggregate_weighted.1
= control target key start
LH: loop header
LB: loop body
LE: loop exit
PB: predicated region body
PF: predicated region fallthrough
CT: control target
= control target key end

     0   :  { %vm33_vm0 = vcmask 261120   ;;  %s310_s0 = inlined_call_operand.vmem [shape: f32[16,32], index: 0, kind: input, shape index: {}]   ;;  %s311_s1 = inlined_call_operand.vmem [shape: f32[1,32], index: 1, kind: input, shape index: {}]   ;;  %s312_s2 = inlined_call_operand.vmem [shape: f32[32,128], index: 2, kind: input, shape index: {}]   ;;  %s313_s3 = inlined_call_operand.vmem [shape: f32[1,128], index: 3, kind: input, shape index: {}]   ;;  %s314_s4 = inlined_call_operand.<no memory space> [shape: f32[1,1], index: 4, kind: input, shape index: {}]   ;;  %s315_s5 = inlined_call_operand.hbm [shape: f32[16,128], index: 5, kind: output, shape index: {}]  }
   0x1   :  { %v56_v0 = vld [vmem:[%s312_s2] sm:$0xff]  ;;  %v57_v1 = vld [vmem:[%s312_s2 + $0x8] sm:$0xff]  ;;  %v58_v2 = vld [vmem:[%s312_s2 + $0x10] sm:$0xff] }
   0x2   :  { %v191_v3 = vpack.c.bf16 %v57_v1, %v56_v0  ;;  %v59_v4 = vld [vmem:[%s312_s2 + $0x18] sm:$0xff]  ;;  %v22_v5 = vld [vmem:[%s310_s0] sm:$0xff]  ;;  %v23_v9 = vld [vmem:[%s310_s0 + $0x8] sm:$0xff] }
   0x3   :  { %v168_v6 = vld [vmem:[%s311_s1] ss:$0 sm:$0xff]  ;;  %v195_v7 = vpack.c.bf16 %v59_v4, %v58_v2  ;;  %188 = vmatprep.mubr.msk.f32.mxu0 %vm33_vm0, %v22_v5 }
   0x4   :  { %v31_v8 = vmul.f32 %v168_v6, %v22_v5 }
   0x5   :  { %11 = vsyncpa [#allocation4], 0  ;;  %192 = vmatprep.subr.bf16.mxu0 %v191_v3  ;;  %v32_v10 = vmul.f32 %v168_v6, %v23_v9  ;;  %v41_v15 = vstv %s314_s4  ;;  %v171_v24 = vld [vmem:[%s313_s3] ss:$0 sm:$0xff]  ;;  %s234_s8 = smov [#allocation3]  }
   0x6   :  { %194 = vmatpush3.bf16.msra.mxu0 %v191_v3  ;;  %v34_v11 = vsel %vm33_vm0, %v31_v8, 0.0  ;;  %s157_s4 = sshll.u32 %s234_s8, 4  ;;  %s158_s4 = int_to_ptr.vmem [resolvable:$true] %s157_s4 }
   0x7   :  { %196 = vmatprep.subr.bf16.mxu0 %v195_v7  ;;  %35 = vadd.xlane.f32.xlu0 %v34_v11  ;;  %v37_v12 = vsel %vm33_vm0, %v32_v10, 0.0  ;;  %s210_s9 = scalar_lea.vmem %s158_s4, 256  ;;  %p215_p1 = scmp.lt.s32.totalorder %s158_s4, %s158_s4 }
   0x8   :  { %p211_p0 = scmp.ne.s32.totalorder %s158_s4, %s210_s9  ;;  %p216_p2 = scmp.lt.s32.totalorder %s210_s9, %s210_s9 }
   0xa   :  { %198 = vmatpush3.bf16.msra.mxu0 %v195_v7  ;;  %p217_p3 = por %p216_p2, %p215_p1 }
   0xb   :  { %38 = vadd.xlane.f32.xlu0 %v37_v12 }
   0xc   :  { %p218_p4 = pnand %p217_p3, %p211_p0 }
   0xd   :  { %189 = vmatmul.mubr.msk.f32.vlgmr.msra.gmra.mrb[0].mxu0 %vm33_vm0, %v23_v9 }
  0x94   :  { %v36_v13 = vpop.xlane.xlu0 %35 }
  0x95   :  { %v42_v17 = vadd.f32 %v41_v15, %v36_v13 }
  0x97   :  { %v169_v19 = vmul.f32 -1.442695, %v42_v17 }
  0x98   :  { %v39_v14 = vpop.xlane.xlu0 %38 }
  0x99   :  { %v43_v16 = vadd.f32 %v41_v15, %v39_v14 }
  0x9b   :  { %v170_v18 = vmul.f32 -1.442695, %v43_v16 }
  0x9d   :  { %202 = vpow2.f32 %v170_v18 }
  0x9e   :  { %204 = vpow2.f32 %v169_v19 }
  0xa7   :  { %v203_v20 = vpop.eup %202 }
  0xa8   :  { %v205_v21 = vpop.eup %204  ;;  %v51_v22 = vadd.f32 1.0, %v203_v20 }
  0xa9   :  { %v50_v23 = vadd.f32 1.0, %v205_v21 }
  0xaa   :  { %206 = vrcp.f32 %v51_v22 }
  0xab   :  { %208 = vrcp.f32 %v50_v23 }
  0xb4   :  { %v207_v25 = vpop.eup %206 }
  0xb5   :  { %v209_v30 = vpop.eup %208 }
  0xe0   :  { %v190_v26 = vpop.f32.mrb[0].mxu0 }
  0xe1   :  { %v145_v27 = vadd.f32 %v190_v26, %v171_v24  ;;  %v139_v28 = vpop.f32.mrb[1].mxu0 }
  0xe2   :  { %v140_v29 = vadd.f32 %v171_v24, %v139_v28 }
  0xe3   :  { %v149_v31 = vmul.f32 %v207_v25, %v145_v27 }
  0xe4   :  { %v148_v32 = vmul.f32 %v209_v30, %v140_v29 }
  0xe5   :  { %151 = vst [vmem:[#allocation3 + $0x8] sm:$0xff] %v149_v31 }
  0xe6   :  { %150 = vst [vmem:[#allocation3] sm:$0xff] %v148_v32 }
  0xe7   :  { %221 = shalt.err (!%p218_p4)
}
  0xe8   :  { %s222_s11 = scalar_lea.hbm %s315_s5, 256 }
  0xe9   :  { %p223_p5 = scmp.ne.s32.totalorder %s315_s5, %s222_s11  ;;  %p226_p6 = scmp.lt.u32.totalorder %s222_s11, %s315_s5 }
  0xeb   :  { %p228_p7 = pnand %p226_p6, %p223_p5 }
  0xed   :  { %231 = shalt.err (!%p228_p7)
}
  0xee   :  { %s235_s16 = smov 128   ;;  %s236_s17 = smov 8  }
  0xef   :  { %163 = dma.vmem_to_hbm [thread:$0]  %s158_s4, 256, %s315_s5, [#allocation4], %s235_s16, %s235_s16, %s236_s17  }
  0xf0   :  { %232 = dma.done.wait [#allocation4], 256  }
  0xf1   :  { %233 = vsyncadd [#allocation4], 4294967040 }
  0xf2   :  { %167 = vsyncpa [#allocation4], 1 }

</bundles_post_ra>
